<compile_context>
chip_gen: v7x
topology: tpu7x:2x2x1
jax: 0.10.0
libtpu: 0.0.40
codegen_flags: <defaults>
</compile_context>

<pallas_src>
import jax
import jax.numpy as jnp
from jax import lax
from jax.experimental import pallas as pl
from jax.experimental.pallas import tpu as pltpu


# ---------------------------------------------------------------------------
# Row-tiled matmul + bias kernel.  Used for the hoisted input projection and
# the deferred output Linear.  Weight (K, N) and bias (1, N) stay resident;
# the grid walks row tiles of x / out.
# ---------------------------------------------------------------------------
def _matmul_bias_kernel(x_ref, w_ref, b_ref, o_ref):
    o_ref[...] = (
        jnp.dot(x_ref[...], w_ref[...], preferred_element_type=jnp.float32)
        + b_ref[...]
    ).astype(o_ref.dtype)


def matmul_bias(x, w_t, b, *, tm=256):
    """x: (M, K), w_t: (K, N), b: (N,) -> (M, N) f32.  M must be a multiple of 8."""
    M, K = x.shape
    N = w_t.shape[1]
    tm_eff = min(tm, M)
    M_pad = pl.cdiv(M, tm_eff) * tm_eff
    if M_pad != M:
        x = jnp.pad(x, ((0, M_pad - M), (0, 0)))

    out = pl.pallas_call(
        _matmul_bias_kernel,
        out_shape=jax.ShapeDtypeStruct((M_pad, N), jnp.float32),
        grid_spec=pltpu.PrefetchScalarGridSpec(
            num_scalar_prefetch=0,
            grid=(M_pad // tm_eff,),
            in_specs=[
                pl.BlockSpec((tm_eff, K), lambda i: (i, 0)),  # x row tile
                pl.BlockSpec((K, N), lambda i: (0, 0)),       # W^T resident
                pl.BlockSpec((1, N), lambda i: (0, 0)),       # bias resident
            ],
            out_specs=pl.BlockSpec((tm_eff, N), lambda i: (i, 0)),
        ),
        compiler_params=pltpu.CompilerParams(
            dimension_semantics=("parallel",),
        ),
    )(x, w_t, b.reshape(1, N))
    return out[:M]


# ---------------------------------------------------------------------------
# GRU recurrence kernel: one grid step == one chunk of Tc timesteps.
# ---------------------------------------------------------------------------
def gru_recurrence_kernel(gir_ref, giz_ref, gin_ref,
                          whr_ref, whz_ref, whn_ref, bhn_ref,
                          h_out_ref, h_scratch):
    """
    gir/giz/gin : (Tc, B, H) precomputed input-side gate pre-activations
                  (b_ih folded in; b_hh for r/z gates folded in too)
    whr/whz/whn : (H, H) per-gate transposed hidden weights (W_h*^T)
    bhn         : (1, H) hidden bias of the n gate (must stay inside r*(...))
    h_out_ref   : (Tc, B, H) recurrent outputs for this chunk
    h_scratch   : (B, H) hidden state persisting across grid steps
    """
    c = pl.program_id(0)

    @pl.when(c == 0)
    def _():
        h_scratch[...] = jnp.zeros_like(h_scratch)

    B, H = h_scratch.shape
    tc = gir_ref.shape[0]

    # Hoist loop-invariant loads / broadcasts out of the unrolled loop.
    whr = whr_ref[...]
    whz = whz_ref[...]
    whn = whn_ref[...]
    bhn = jnp.broadcast_to(bhn_ref[...], (B, H))

    def step(s, h_prev):
        gr = gir_ref[s]                                   # (B, H)
        gz = giz_ref[s]
        gn = gin_ref[s]
        hr = jnp.dot(h_prev, whr, preferred_element_type=jnp.float32)
        hz = jnp.dot(h_prev, whz, preferred_element_type=jnp.float32)
        hn = jnp.dot(h_prev, whn, preferred_element_type=jnp.float32)
        r = jax.nn.sigmoid(gr + hr)
        z = jax.nn.sigmoid(gz + hz)
        n = jnp.tanh(gn + r * (hn + bhn))
        h_new = (1.0 - z) * n + z * h_prev
        h_out_ref[s] = h_new.astype(h_out_ref.dtype)
        return h_new

    # Unrolled inner loop over the chunk (LLO scheduler sees the whole window).
    h_last = lax.fori_loop(0, tc, step, h_scratch[...], unroll=True)
    h_scratch[...] = h_last


def _pick_chunk(T, desired):
    tc = max(1, min(desired, T))
    while T % tc:
        tc -= 1
    return tc


# ---------------------------------------------------------------------------
# Wrapper: GRU + Linear embedding forward.
# ---------------------------------------------------------------------------
def gru_linear_forward(x, w_ih, w_hh, b_ih, b_hh, w_emb, b_emb, *, tc=16):
    """x: (T, B, nIn) f32.  Returns (T, B, nOut) f32."""
    T, B, nIn = x.shape
    H3 = w_ih.shape[0]
    H = H3 // 3
    nOut = w_emb.shape[0]

    # Pad batch to >= 8 rows (f32 sublane tile).  Padded rows are independent
    # and discarded at the end.
    B_pad = max(8, ((B + 7) // 8) * 8)
    if B_pad != B:
        x = jnp.pad(x, ((0, 0), (0, B_pad - B), (0, 0)))

    # --- 1) Hoisted input projection: one big row-tiled GEMM. ---------------
    # Fold b_ih for all gates and b_hh for the r/z gates into the GEMM bias.
    bias_in = b_ih + jnp.concatenate(
        [b_hh[:2 * H], jnp.zeros((H,), b_hh.dtype)])
    gi = matmul_bias(x.reshape(T * B_pad, nIn), jnp.transpose(w_ih), bias_in)
    gi = gi.reshape(T, B_pad, H3)
    gi_r = gi[:, :, :H]
    gi_z = gi[:, :, H:2 * H]
    gi_n = gi[:, :, 2 * H:]

    # --- 2) Serial recurrence, chunked over T. ------------------------------
    tc_eff = _pick_chunk(T, tc)
    whr_t = jnp.transpose(w_hh[:H])          # (H, H)
    whz_t = jnp.transpose(w_hh[H:2 * H])     # (H, H)
    whn_t = jnp.transpose(w_hh[2 * H:])      # (H, H)
    bhn = b_hh[2 * H:].reshape(1, H)

    chunk_spec = pl.BlockSpec((tc_eff, B_pad, H), lambda c: (c, 0, 0))
    grid_spec = pltpu.PrefetchScalarGridSpec(
        num_scalar_prefetch=0,
        grid=(T // tc_eff,),
        in_specs=[
            chunk_spec,                                   # gi_r
            chunk_spec,                                   # gi_z
            chunk_spec,                                   # gi_n
            pl.BlockSpec((H, H), lambda c: (0, 0)),       # W_hr^T (resident)
            pl.BlockSpec((H, H), lambda c: (0, 0)),       # W_hz^T
            pl.BlockSpec((H, H), lambda c: (0, 0)),       # W_hn^T
            pl.BlockSpec((1, H), lambda c: (0, 0)),       # b_hn
        ],
        out_specs=pl.BlockSpec((tc_eff, B_pad, H), lambda c: (c, 0, 0)),
        scratch_shapes=[pltpu.VMEM((B_pad, H), jnp.float32)],
    )

    h = pl.pallas_call(
        gru_recurrence_kernel,
        out_shape=jax.ShapeDtypeStruct((T, B_pad, H), jnp.float32),
        grid_spec=grid_spec,
        compiler_params=pltpu.CompilerParams(
            # T-chunk axis is a true recurrence: MUST stay sequential.
            dimension_semantics=("arbitrary",),
            vmem_limit_bytes=64 * 1024 * 1024,
        ),
    )(gi_r, gi_z, gi_n, whr_t, whz_t, whn_t, bhn)

    # --- 3) Deferred output Linear: one big row-tiled GEMM. -----------------
    out = matmul_bias(h.reshape(T * B_pad, H), jnp.transpose(w_emb), b_emb)
    out = out.reshape(T, B_pad, nOut)
    return out[:, :B, :]


# ---------------------------------------------------------------------------
# Pure-JAX reference matching torch.nn.GRU + nn.Linear semantics.
# ---------------------------------------------------------------------------
def reference_forward(x, w_ih, w_hh, b_ih, b_hh, w_emb, b_emb):
    T, B, nIn = x.shape
    H = w_hh.shape[1]

    def step(h_prev, x_t):
        gi = x_t @ w_ih.T + b_ih
        gh = h_prev @ w_hh.T + b_hh
        i_r, i_z, i_n = gi[:, :H], gi[:, H:2 * H], gi[:, 2 * H:]
        h_r, h_z, h_n = gh[:, :H], gh[:, H:2 * H], gh[:, 2 * H:]
        r = jax.nn.sigmoid(i_r + h_r)
        z = jax.nn.sigmoid(i_z + h_z)
        n = jnp.tanh(i_n + r * h_n)
        h_new = (1.0 - z) * n + z * h_prev
        return h_new, h_new

    h0 = jnp.zeros((B, H), jnp.float32)
    _, recurrent = lax.scan(step, h0, x)        # (T, B, H)
    return recurrent @ w_emb.T + b_emb          # (T, B, nOut)


if __name__ == "__main__":
    # Small shapes consistent with the module's forward: seq T, batch b, nIn.
    T, B = 8, 2
    nIn, nHidden, nOut = 16, 32, 16

    key = jax.random.PRNGKey(0)
    ks = jax.random.split(key, 8)
    bound = 1.0 / jnp.sqrt(nHidden)   # PyTorch default init range for GRU/Linear

    x = jax.random.normal(ks[0], (T, B, nIn), jnp.float32)
    w_ih = jax.random.uniform(ks[1], (3 * nHidden, nIn), jnp.float32, -bound, bound)
    w_hh = jax.random.uniform(ks[2], (3 * nHidden, nHidden), jnp.float32, -bound, bound)
    b_ih = jax.random.uniform(ks[3], (3 * nHidden,), jnp.float32, -bound, bound)
    b_hh = jax.random.uniform(ks[4], (3 * nHidden,), jnp.float32, -bound, bound)
    w_emb = jax.random.uniform(ks[5], (nOut, nHidden), jnp.float32, -bound, bound)
    b_emb = jax.random.uniform(ks[6], (nOut,), jnp.float32, -bound, bound)

    # tc=4 -> grid=(2,) so hidden-state persistence across grid steps is
    # exercised even at this tiny T.
    out = gru_linear_forward(x, w_ih, w_hh, b_ih, b_hh, w_emb, b_emb, tc=4)
    out = jax.block_until_ready(out)

    ref = reference_forward(x, w_ih, w_hh, b_ih, b_hh, w_emb, b_emb)
    assert out.shape == (T, B, nOut)
    assert jnp.max(jnp.abs(out - ref)) < 2e-4

    print("KERNEL_OK")
</pallas_src>

<mosaic_0001>
module attributes {stable_mosaic.version = 11 : i64} {
  func.func @_matmul_bias_kernel(%arg0: i32, %arg1: memref<64x16xf32, #tpu.memory_space<vmem>>, %arg2: memref<16x96xf32, #tpu.memory_space<vmem>>, %arg3: memref<1x96xf32, #tpu.memory_space<vmem>>, %arg4: memref<64x96xf32, #tpu.memory_space<vmem>>) attributes {dimension_semantics = [#tpu.dimension_semantics<parallel>], iteration_bounds = array<i64: 1>, scalar_prefetch = 0 : i64, scratch_operands = 0 : i64, tpu.core_type = #tpu.core_type<tc>, window_params = [{transform_indices = @transform_0, window_bounds = array<i64: 64, 16>}, {pipeline_mode = #tpu.pipeline_mode<synchronous>, transform_indices = @transform_1, window_bounds = array<i64: 16, 96>}, {pipeline_mode = #tpu.pipeline_mode<synchronous>, transform_indices = @transform_2, window_bounds = array<i64: 1, 96>}, {transform_indices = @transform_3, window_bounds = array<i64: 64, 96>}]} {
    %c0 = arith.constant 0 : index
    %c0_0 = arith.constant 0 : index
    %0 = vector.load %arg1[%c0, %c0_0] : memref<64x16xf32, #tpu.memory_space<vmem>>, vector<64x16xf32>
    %c0_1 = arith.constant 0 : index
    %c0_2 = arith.constant 0 : index
    %1 = vector.load %arg2[%c0_1, %c0_2] : memref<16x96xf32, #tpu.memory_space<vmem>>, vector<16x96xf32>
    %cst = arith.constant dense<0.000000e+00> : vector<64x96xf32>
    %2 = tpu.matmul %0, %1, %cst {dimension_numbers = #tpu.dot_dimension_numbers<[1], [0], [0], [1], [0, 0, 1, 1], [], []>} : vector<64x16xf32>, vector<16x96xf32>, vector<64x96xf32> -> vector<64x96xf32>
    %c0_3 = arith.constant 0 : index
    %c0_4 = arith.constant 0 : index
    %3 = vector.load %arg3[%c0_3, %c0_4] : memref<1x96xf32, #tpu.memory_space<vmem>>, vector<1x96xf32>
    %4 = vector.broadcast %3 : vector<1x96xf32> to vector<64x96xf32>
    %5 = arith.addf %2, %4 : vector<64x96xf32>
    %c0_5 = arith.constant 0 : index
    %c0_6 = arith.constant 0 : index
    %6 = vector.load %arg4[%c0_5, %c0_6] : memref<64x96xf32, #tpu.memory_space<vmem>>, vector<64x96xf32>
    tpu.vector_store %arg4[%c0_5, %c0_6], %5 {strides = array<i32>} : memref<64x96xf32, #tpu.memory_space<vmem>>, vector<64x96xf32>,
    return
  }
  func.func @transform_0(%arg0: i32) -> (i32, i32) {
    %c0_i32 = arith.constant 0 : i32
    %c0_i32_0 = arith.constant 0 : i32
    return %arg0, %c0_i32 : i32, i32
  }
  func.func @transform_1(%arg0: i32) -> (i32, i32) {
    %c0_i32 = arith.constant 0 : i32
    %c0_i32_0 = arith.constant 0 : i32
    %c0_i32_1 = arith.constant 0 : i32
    return %c0_i32, %c0_i32_0 : i32, i32
  }
  func.func @transform_2(%arg0: i32) -> (i32, i32) {
    %c0_i32 = arith.constant 0 : i32
    %c0_i32_0 = arith.constant 0 : i32
    %c0_i32_1 = arith.constant 0 : i32
    return %c0_i32, %c0_i32_0 : i32, i32
  }
  func.func @transform_3(%arg0: i32) -> (i32, i32) {
    %c0_i32 = arith.constant 0 : i32
    %c0_i32_0 = arith.constant 0 : i32
    return %arg0, %c0_i32 : i32, i32
  }
}

</mosaic_0001>

<bundles_post_ra>
// kernel: tpu_custom_call.1
= control target key start
LH: loop header
LB: loop body
LE: loop exit
PB: predicated region body
PF: predicated region fallthrough
CT: control target
= control target key end

     0   :  { %vm32_vm0 = vcmask 130048   ;;  %s339_s0 = inlined_call_operand.vmem [shape: f32[64,16], index: 0, kind: input, shape index: {}]   ;;  %s340_s1 = inlined_call_operand.vmem [shape: f32[16,96], index: 1, kind: input, shape index: {}]   ;;  %s341_s2 = inlined_call_operand.vmem [shape: f32[1,96], index: 2, kind: input, shape index: {}]   ;;  %s342_s3 = inlined_call_operand.hbm [shape: f32[64,96], index: 3, kind: output, shape index: {}]  }
   0x1   :  { %v23_v0 = vld [vmem:[%s340_s1] sm:$0xff]  ;;  %v24_v1 = vld [vmem:[%s340_s1 + $0x8] sm:$0xff] }
   0x2   :  { %v15_v2 = vld [vmem:[%s339_s0] sm:$0xff]  ;;  %v222_v3 = vpack.c.bf16 %v24_v1, %v23_v0 }
   0x3   :  { %210 = vmatprep.mubr.msk.f32.mxu0 %vm32_vm0, %v15_v2  ;;  %v19_v4 = vld [vmem:[%s339_s0 + $0x20] sm:$0xff] }
   0x4   :  { %216 = vmatprep.mubr.msk.f32.mxu1 %vm32_vm0, %v19_v4  ;;  %223 = vmatprep.subr.bf16.mxu0 %v222_v3 }
   0x5   :  { %226 = vmatprep.subr.bf16.mxu1 %v222_v3 }
   0x6   :  { %8 = vsyncpa [#allocation3], 0  ;;  %225 = vmatpush3.bf16.msra.mxu0 %v222_v3  ;;  %227 = vmatpush3.bf16.msra.mxu1 %v222_v3  ;;  %v16_v5 = vld [vmem:[%s339_s0 + $0x8] sm:$0xff]  ;;  %v17_v7 = vld [vmem:[%s339_s0 + $0x10] sm:$0xff]  ;;  %vm162_vm1 = vcmask 785408   ;;  %s255_s6 = smov [#allocation2]  }
   0x7   :  { %v20_v6 = vld [vmem:[%s339_s0 + $0x28] sm:$0xff]  ;;  %v21_v8 = vld [vmem:[%s339_s0 + $0x30] sm:$0xff]  ;;  %v18_v9 = vld [vmem:[%s339_s0 + $0x18] sm:$0xff]  ;;  %s176_s7 = sshll.u32 %s255_s6, 4  ;;  %s177_s7 = int_to_ptr.vmem [resolvable:$true] %s176_s7 }
   0x8   :  { %v22_v10 = vld [vmem:[%s339_s0 + $0x38] sm:$0xff]  ;;  %v187_v11 = vld [vmem:[%s341_s2] ss:$0 sm:$0xff]  ;;  %s231_s0 = scalar_lea.vmem %s177_s7, 1024  ;;  %p236_p1 = scmp.lt.s32.totalorder %s177_s7, %s177_s7 }
   0x9   :  { %211 = vmatmul.mubr.msk.f32.vlgmr.msra.gmra.mrb[0].mxu0 %vm32_vm0, %v16_v5  ;;  %217 = vmatmul.mubr.msk.f32.vlgmr.msra.gmra.mrb[0].mxu1 %vm32_vm0, %v20_v6  ;;  %p232_p0 = scmp.ne.s32.totalorder %s177_s7, %s231_s0  ;;  %p237_p2 = scmp.lt.s32.totalorder %s231_s0, %s231_s0 }
   0xa   :  { %213 = vmatprep.mubr.msk.f32.mxu0 %vm32_vm0, %v17_v7  ;;  %219 = vmatprep.mubr.msk.f32.mxu1 %vm32_vm0, %v21_v8 }
   0xb   :  { %p238_p3 = por %p237_p2, %p236_p1 }
   0xd   :  { %214 = vmatmul.mubr.msk.f32.gmra.mrb[2].mxu0 %vm32_vm0, %v18_v9  ;;  %220 = vmatmul.mubr.msk.f32.gmra.mrb[2].mxu1 %vm32_vm0, %v22_v10  ;;  %p239_p4 = pnand %p238_p3, %p232_p0 }
  0xdc   :  { %v212_v12 = vpop.f32.mrb[0].mxu0  ;;  %v218_v13 = vpop.f32.mrb[0].mxu1 }
  0xdd   :  { %v129_v14 = vadd.f32 %v212_v12, %v187_v11  ;;  %v149_v15 = vadd.f32 %v218_v13, %v187_v11  ;;  %v123_v16 = vpop.f32.mrb[1].mxu0  ;;  %v143_v17 = vpop.f32.mrb[1].mxu1 }
  0xde   :  { %v124_v18 = vadd.f32 %v187_v11, %v123_v16  ;;  %v144_v19 = vadd.f32 %v187_v11, %v143_v17 }
  0xdf   :  { %164 = vst.msk [vmem:[#allocation2 + $0x8] sm:$0xff] %vm162_vm1, %v129_v14  ;;  %168 = vst.msk [vmem:[#allocation2 + $0x28] sm:$0xff] %vm162_vm1, %v149_v15 }
  0xe0   :  { %163 = vst.msk [vmem:[#allocation2] sm:$0xff] %vm162_vm1, %v124_v18  ;;  %167 = vst.msk [vmem:[#allocation2 + $0x20] sm:$0xff] %vm162_vm1, %v144_v19  ;;  %v215_v20 = vpop.f32.mrb[2].mxu0  ;;  %v221_v21 = vpop.f32.mrb[2].mxu1 }
  0xe1   :  { %v139_v22 = vadd.f32 %v215_v20, %v187_v11  ;;  %v159_v23 = vadd.f32 %v221_v21, %v187_v11  ;;  %v133_v24 = vpop.f32.mrb[3].mxu0  ;;  %v153_v25 = vpop.f32.mrb[3].mxu1 }
  0xe2   :  { %v134_v26 = vadd.f32 %v187_v11, %v133_v24  ;;  %v154_v27 = vadd.f32 %v187_v11, %v153_v25 }
  0xe3   :  { %166 = vst.msk [vmem:[#allocation2 + $0x18] sm:$0xff] %vm162_vm1, %v139_v22  ;;  %170 = vst.msk [vmem:[#allocation2 + $0x38] sm:$0xff] %vm162_vm1, %v159_v23 }
  0xe4   :  { %165 = vst.msk [vmem:[#allocation2 + $0x10] sm:$0xff] %vm162_vm1, %v134_v26  ;;  %169 = vst.msk [vmem:[#allocation2 + $0x30] sm:$0xff] %vm162_vm1, %v154_v27 }
  0xe5   :  { %242 = shalt.err (!%p239_p4)
}
  0xe6   :  { %s243_s9 = scalar_lea.hbm %s342_s3, 1024 }
  0xe7   :  { %p244_p5 = scmp.ne.s32.totalorder %s342_s3, %s243_s9  ;;  %p247_p6 = scmp.lt.u32.totalorder %s243_s9, %s342_s3 }
  0xe9   :  { %p249_p7 = pnand %p247_p6, %p244_p5 }
  0xeb   :  { %252 = shalt.err (!%p249_p7)
}
  0xec   :  { %s256_s14 = smov 128   ;;  %s257_s15 = smov 8  }
  0xed   :  { %182 = dma.vmem_to_hbm [thread:$0]  %s177_s7, 1024, %s342_s3, [#allocation3], %s256_s14, %s256_s14, %s257_s15  }
  0xee   :  { %253 = dma.done.wait [#allocation3], 1024  }
  0xef   :  { %254 = vsyncadd [#allocation3], 4294966272 }
  0xf0   :  { %186 = vsyncpa [#allocation3], 1 }

</bundles_post_ra>
